<compile_context>
chip_gen: v5e
topology: v5e:2x2
jax: 0.10.0
libtpu: 0.0.40
codegen_flags: <defaults>
</compile_context>

<pallas_src>
import jax
import jax.numpy as jnp
from jax.experimental import pallas as pl
from jax.experimental.pallas import tpu as pltpu

_LANE = 128  # TPU lane width


def _round_up(x, m):
    return (x + m - 1) // m * m


def _policy_kernel(x_ref, w1_ref, b1_ref, w2_ref, b2_ref, w3_ref, b3_ref,
                   scale_ref, bias_ref, out_ref):
    # x = relu(state @ W1 + b1)   -- bf16 MXU operands, f32 accumulate/epilogue
    x = x_ref[...].astype(jnp.bfloat16)
    h1 = jnp.dot(x, w1_ref[...], preferred_element_type=jnp.float32) + b1_ref[...]
    h1 = jnp.maximum(h1, 0.0)
    # x = relu(x @ W2 + b2)
    h2 = jnp.dot(h1.astype(jnp.bfloat16), w2_ref[...],
                 preferred_element_type=jnp.float32) + b2_ref[...]
    h2 = jnp.maximum(h2, 0.0)
    # mean = tanh(x @ W3 + b3) * action_scale + action_bias   (lane-padded N)
    m = jnp.dot(h2.astype(jnp.bfloat16), w3_ref[...],
                preferred_element_type=jnp.float32) + b3_ref[...]
    out_ref[...] = jnp.tanh(m) * scale_ref[...] + bias_ref[...]


def deterministic_policy_forward(state, params, *, tb_max=512):
    """Fused MLP forward pass, batch-tiled over a 1-D Pallas grid."""
    w1, b1, w2, b2, w3, b3, action_scale, action_bias = params
    B, num_inputs = state.shape
    H = w1.shape[1]
    num_actions = w3.shape[1]

    # --- Lane-dense output: pad the last layer's output dim to a multiple of 128.
    na_pad = _round_up(num_actions, _LANE)
    pad_n = na_pad - num_actions
    w3p = jnp.pad(w3, ((0, 0), (0, pad_n)))
    b3p = jnp.pad(b3, ((0, 0), (0, pad_n)))
    scalep = jnp.pad(action_scale, ((0, 0), (0, pad_n)), constant_values=1.0)
    biasp = jnp.pad(action_bias, ((0, 0), (0, pad_n)))

    # --- bf16 weights for the MXU (halves resident VMEM / HBM traffic).
    w1c = w1.astype(jnp.bfloat16)
    w2c = w2.astype(jnp.bfloat16)
    w3c = w3p.astype(jnp.bfloat16)

    # --- Batch tiling (TB rows per grid step, multiple of 8 f32 sublanes).
    tb = min(tb_max, _round_up(B, 8))
    tb = _round_up(tb, 8)
    b_pad = _round_up(B, tb)
    state_p = jnp.pad(state, ((0, b_pad - B), (0, 0))) if b_pad != B else state
    grid = (b_pad // tb,)

    def const2d(shape):
        # Weight/bias blocks: full array, same block for every grid step
        # (fetched once, VMEM-resident).
        return pl.BlockSpec(shape, lambda i: (0, 0))

    cost = pl.CostEstimate(
        flops=2 * b_pad * (num_inputs * H + H * H + H * na_pad),
        transcendentals=b_pad * na_pad,
        bytes_accessed=int(
            state_p.size * 4
            + (w1c.size + w2c.size + w3c.size) * 2
            + (b1.size + b2.size + b3p.size + scalep.size + biasp.size) * 4
            + b_pad * na_pad * 4),
    )

    # --- VMEM budget: double-buffered streamed tiles + resident weights + headroom.
    est_vmem = (2 * 4 * tb * (num_inputs + na_pad)
                + 2 * (w1c.size + w2c.size + w3c.size)
                + 4 * (b1.size + b2.size + b3p.size + scalep.size + biasp.size)
                + 4 * tb * max(H, na_pad) * 4)
    vmem_limit = int(min(96 * 2**20, max(2 * est_vmem, 8 * 2**20)))

    out = pl.pallas_call(
        _policy_kernel,
        out_shape=jax.ShapeDtypeStruct((b_pad, na_pad), jnp.float32),
        grid=grid,
        in_specs=[
            pl.BlockSpec((tb, num_inputs), lambda i: (i, 0)),   # streamed state
            const2d(w1c.shape), const2d(b1.shape),
            const2d(w2c.shape), const2d(b2.shape),
            const2d(w3c.shape), const2d(b3p.shape),
            const2d(scalep.shape), const2d(biasp.shape),
        ],
        out_specs=pl.BlockSpec((tb, na_pad), lambda i: (i, 0)),
        compiler_params=pltpu.CompilerParams(
            dimension_semantics=("parallel",),
            vmem_limit_bytes=vmem_limit,
        ),
        cost_estimate=cost,
    )(state_p, w1c, b1, w2c, b2, w3c, b3p, scalep, biasp)

    return out[:B, :num_actions]


def init_params(key, num_inputs, num_actions, hidden_dim):
    """Deterministic init mirroring nn.Linear shapes (weights stored (in, out))."""
    k1, k2, k3, k4, k5, k6 = jax.random.split(key, 6)

    def linear_init(kw, kb, fan_in, fan_out):
        bound = 1.0 / jnp.sqrt(fan_in)
        w = jax.random.uniform(kw, (fan_in, fan_out), jnp.float32, -bound, bound)
        b = jax.random.uniform(kb, (1, fan_out), jnp.float32, -bound, bound)
        return w, b

    w1, b1 = linear_init(k1, k2, num_inputs, hidden_dim)
    w2, b2 = linear_init(k3, k4, hidden_dim, hidden_dim)
    w3, b3 = linear_init(k5, k6, hidden_dim, num_actions)

    # action_space is None in the module default -> scale 1.0, bias 0.0
    action_scale = jnp.ones((1, num_actions), jnp.float32)
    action_bias = jnp.zeros((1, num_actions), jnp.float32)
    return (w1, b1, w2, b2, w3, b3, action_scale, action_bias)


def reference_forward(state, params):
    """Pure-JAX f32 reference for correctness checking."""
    w1, b1, w2, b2, w3, b3, action_scale, action_bias = params
    x = jnp.maximum(state @ w1 + b1, 0.0)
    x = jnp.maximum(x @ w2 + b2, 0.0)
    return jnp.tanh(x @ w3 + b3) * action_scale + action_bias


if __name__ == "__main__":
    num_inputs, num_actions, hidden_dim = 16, 8, 32

    key = jax.random.PRNGKey(0)
    k_params, k_state1, k_state2 = jax.random.split(key, 3)
    params = init_params(k_params, num_inputs, num_actions, hidden_dim)

    # Case 1: small batch, single grid step.
    state = jax.random.normal(k_state1, (4, num_inputs), jnp.float32)
    out = jax.block_until_ready(deterministic_policy_forward(state, params))
    ref = reference_forward(state, params)
    assert out.shape == (4, num_actions)
    assert jnp.allclose(out, ref, atol=2e-2, rtol=2e-2), "mismatch vs reference (case 1)"

    # Case 2: non-tile-multiple batch exercising the batch grid + tail padding.
    state2 = jax.random.normal(k_state2, (20, num_inputs), jnp.float32)
    out2 = jax.block_until_ready(
        deterministic_policy_forward(state2, params, tb_max=8))
    ref2 = reference_forward(state2, params)
    assert out2.shape == (20, num_actions)
    assert jnp.allclose(out2, ref2, atol=2e-2, rtol=2e-2), "mismatch vs reference (case 2)"

    print("KERNEL_OK")
</pallas_src>

<mosaic_0001>
module attributes {stable_mosaic.version = 11 : i64} {
  func.func @_policy_kernel(%arg0: i32, %arg1: memref<8x16xf32, #tpu.memory_space<vmem>>, %arg2: memref<16x32xbf16, #tpu.memory_space<vmem>>, %arg3: memref<1x32xf32, #tpu.memory_space<vmem>>, %arg4: memref<32x32xbf16, #tpu.memory_space<vmem>>, %arg5: memref<1x32xf32, #tpu.memory_space<vmem>>, %arg6: memref<32x128xbf16, #tpu.memory_space<vmem>>, %arg7: memref<1x128xf32, #tpu.memory_space<vmem>>, %arg8: memref<1x128xf32, #tpu.memory_space<vmem>>, %arg9: memref<1x128xf32, #tpu.memory_space<vmem>>, %arg10: memref<8x128xf32, #tpu.memory_space<vmem>>) attributes {dimension_semantics = [#tpu.dimension_semantics<parallel>], iteration_bounds = array<i64: 1>, scalar_prefetch = 0 : i64, scratch_operands = 0 : i64, tpu.core_type = #tpu.core_type<tc>, window_params = [{transform_indices = @transform_0, window_bounds = array<i64: 8, 16>}, {pipeline_mode = #tpu.pipeline_mode<synchronous>, transform_indices = @transform_1, window_bounds = array<i64: 16, 32>}, {pipeline_mode = #tpu.pipeline_mode<synchronous>, transform_indices = @transform_2, window_bounds = array<i64: 1, 32>}, {pipeline_mode = #tpu.pipeline_mode<synchronous>, transform_indices = @transform_3, window_bounds = array<i64: 32, 32>}, {pipeline_mode = #tpu.pipeline_mode<synchronous>, transform_indices = @transform_4, window_bounds = array<i64: 1, 32>}, {pipeline_mode = #tpu.pipeline_mode<synchronous>, transform_indices = @transform_5, window_bounds = array<i64: 32, 128>}, {pipeline_mode = #tpu.pipeline_mode<synchronous>, transform_indices = @transform_6, window_bounds = array<i64: 1, 128>}, {pipeline_mode = #tpu.pipeline_mode<synchronous>, transform_indices = @transform_7, window_bounds = array<i64: 1, 128>}, {pipeline_mode = #tpu.pipeline_mode<synchronous>, transform_indices = @transform_8, window_bounds = array<i64: 1, 128>}, {transform_indices = @transform_9, window_bounds = array<i64: 8, 128>}]} {
    %c0 = arith.constant 0 : index
    %c0_0 = arith.constant 0 : index
    %0 = vector.load %arg1[%c0, %c0_0] : memref<8x16xf32, #tpu.memory_space<vmem>>, vector<8x16xf32>
    %1 = arith.truncf %0 : vector<8x16xf32> to vector<8x16xbf16>
    %c0_1 = arith.constant 0 : index
    %c0_2 = arith.constant 0 : index
    %2 = vector.load %arg2[%c0_1, %c0_2] : memref<16x32xbf16, #tpu.memory_space<vmem>>, vector<16x32xbf16>
    %cst = arith.constant dense<0.000000e+00> : vector<8x32xf32>
    %3 = tpu.matmul %1, %2, %cst {dimension_numbers = #tpu.dot_dimension_numbers<[1], [0], [0], [1], [0, 0, 1, 1], [], []>} : vector<8x16xbf16>, vector<16x32xbf16>, vector<8x32xf32> -> vector<8x32xf32>
    %c0_3 = arith.constant 0 : index
    %c0_4 = arith.constant 0 : index
    %4 = vector.load %arg3[%c0_3, %c0_4] : memref<1x32xf32, #tpu.memory_space<vmem>>, vector<1x32xf32>
    %5 = vector.broadcast %4 : vector<1x32xf32> to vector<8x32xf32>
    %6 = arith.addf %3, %5 : vector<8x32xf32>
    %cst_5 = arith.constant 0.000000e+00 : f32
    %7 = vector.broadcast %cst_5 : f32 to vector<8x32xf32>
    %8 = arith.maximumf %6, %7 : vector<8x32xf32>
    %9 = arith.truncf %8 : vector<8x32xf32> to vector<8x32xbf16>
    %c0_6 = arith.constant 0 : index
    %c0_7 = arith.constant 0 : index
    %10 = vector.load %arg4[%c0_6, %c0_7] : memref<32x32xbf16, #tpu.memory_space<vmem>>, vector<32x32xbf16>
    %cst_8 = arith.constant dense<0.000000e+00> : vector<8x32xf32>
    %11 = tpu.matmul %9, %10, %cst_8 {dimension_numbers = #tpu.dot_dimension_numbers<[1], [0], [0], [1], [0, 0, 1, 1], [], []>} : vector<8x32xbf16>, vector<32x32xbf16>, vector<8x32xf32> -> vector<8x32xf32>
    %c0_9 = arith.constant 0 : index
    %c0_10 = arith.constant 0 : index
    %12 = vector.load %arg5[%c0_9, %c0_10] : memref<1x32xf32, #tpu.memory_space<vmem>>, vector<1x32xf32>
    %13 = vector.broadcast %12 : vector<1x32xf32> to vector<8x32xf32>
    %14 = arith.addf %11, %13 : vector<8x32xf32>
    %cst_11 = arith.constant 0.000000e+00 : f32
    %15 = vector.broadcast %cst_11 : f32 to vector<8x32xf32>
    %16 = arith.maximumf %14, %15 : vector<8x32xf32>
    %17 = arith.truncf %16 : vector<8x32xf32> to vector<8x32xbf16>
    %c0_12 = arith.constant 0 : index
    %c0_13 = arith.constant 0 : index
    %18 = vector.load %arg6[%c0_12, %c0_13] : memref<32x128xbf16, #tpu.memory_space<vmem>>, vector<32x128xbf16>
    %cst_14 = arith.constant dense<0.000000e+00> : vector<8x128xf32>
    %19 = tpu.matmul %17, %18, %cst_14 {dimension_numbers = #tpu.dot_dimension_numbers<[1], [0], [0], [1], [0, 0, 1, 1], [], []>} : vector<8x32xbf16>, vector<32x128xbf16>, vector<8x128xf32> -> vector<8x128xf32>
    %c0_15 = arith.constant 0 : index
    %c0_16 = arith.constant 0 : index
    %20 = vector.load %arg7[%c0_15, %c0_16] : memref<1x128xf32, #tpu.memory_space<vmem>>, vector<1x128xf32>
    %21 = vector.broadcast %20 : vector<1x128xf32> to vector<8x128xf32>
    %22 = arith.addf %19, %21 : vector<8x128xf32>
    %23 = math.tanh %22 : vector<8x128xf32>
    %c0_17 = arith.constant 0 : index
    %c0_18 = arith.constant 0 : index
    %24 = vector.load %arg8[%c0_17, %c0_18] : memref<1x128xf32, #tpu.memory_space<vmem>>, vector<1x128xf32>
    %25 = vector.broadcast %24 : vector<1x128xf32> to vector<8x128xf32>
    %26 = arith.mulf %23, %25 : vector<8x128xf32>
    %c0_19 = arith.constant 0 : index
    %c0_20 = arith.constant 0 : index
    %27 = vector.load %arg9[%c0_19, %c0_20] : memref<1x128xf32, #tpu.memory_space<vmem>>, vector<1x128xf32>
    %28 = vector.broadcast %27 : vector<1x128xf32> to vector<8x128xf32>
    %29 = arith.addf %26, %28 : vector<8x128xf32>
    %c0_21 = arith.constant 0 : index
    %c0_22 = arith.constant 0 : index
    %30 = vector.load %arg10[%c0_21, %c0_22] : memref<8x128xf32, #tpu.memory_space<vmem>>, vector<8x128xf32>
    tpu.vector_store %arg10[%c0_21, %c0_22], %29 {strides = array<i32>} : memref<8x128xf32, #tpu.memory_space<vmem>>, vector<8x128xf32>,
    return
  }
  func.func @transform_0(%arg0: i32) -> (i32, i32) {
    %c0_i32 = arith.constant 0 : i32
    %c0_i32_0 = arith.constant 0 : i32
    return %arg0, %c0_i32 : i32, i32
  }
  func.func @transform_1(%arg0: i32) -> (i32, i32) {
    %c0_i32 = arith.constant 0 : i32
    %c0_i32_0 = arith.constant 0 : i32
    %c0_i32_1 = arith.constant 0 : i32
    return %c0_i32, %c0_i32_0 : i32, i32
  }
  func.func @transform_2(%arg0: i32) -> (i32, i32) {
    %c0_i32 = arith.constant 0 : i32
    %c0_i32_0 = arith.constant 0 : i32
    %c0_i32_1 = arith.constant 0 : i32
    return %c0_i32, %c0_i32_0 : i32, i32
  }
  func.func @transform_3(%arg0: i32) -> (i32, i32) {
    %c0_i32 = arith.constant 0 : i32
    %c0_i32_0 = arith.constant 0 : i32
    %c0_i32_1 = arith.constant 0 : i32
    return %c0_i32, %c0_i32_0 : i32, i32
  }
  func.func @transform_4(%arg0: i32) -> (i32, i32) {
    %c0_i32 = arith.constant 0 : i32
    %c0_i32_0 = arith.constant 0 : i32
    %c0_i32_1 = arith.constant 0 : i32
    return %c0_i32, %c0_i32_0 : i32, i32
  }
  func.func @transform_5(%arg0: i32) -> (i32, i32) {
    %c0_i32 = arith.constant 0 : i32
    %c0_i32_0 = arith.constant 0 : i32
    %c0_i32_1 = arith.constant 0 : i32
    return %c0_i32, %c0_i32_0 : i32, i32
  }
  func.func @transform_6(%arg0: i32) -> (i32, i32) {
    %c0_i32 = arith.constant 0 : i32
    %c0_i32_0 = arith.constant 0 : i32
    %c0_i32_1 = arith.constant 0 : i32
    return %c0_i32, %c0_i32_0 : i32, i32
  }
  func.func @transform_7(%arg0: i32) -> (i32, i32) {
    %c0_i32 = arith.constant 0 : i32
    %c0_i32_0 = arith.constant 0 : i32
    %c0_i32_1 = arith.constant 0 : i32
    return %c0_i32, %c0_i32_0 : i32, i32
  }
  func.func @transform_8(%arg0: i32) -> (i32, i32) {
    %c0_i32 = arith.constant 0 : i32
    %c0_i32_0 = arith.constant 0 : i32
    %c0_i32_1 = arith.constant 0 : i32
    return %c0_i32, %c0_i32_0 : i32, i32
  }
  func.func @transform_9(%arg0: i32) -> (i32, i32) {
    %c0_i32 = arith.constant 0 : i32
    %c0_i32_0 = arith.constant 0 : i32
    return %arg0, %c0_i32 : i32, i32
  }
}

</mosaic_0001>

<bundles_post_ra>
// kernel: tpu_custom_call.1
= control target key start
LH: loop header
LB: loop body
LE: loop exit
PB: predicated region body
PF: predicated region fallthrough
CT: control target
= control target key end

     0   :  { %14 = vsyncpa [#allocation3], 0  ;;  %s491_s0 = inlined_call_operand.hbm [shape: f32[8,16], index: 0, kind: input, shape index: {}]   ;;  %s492_s1 = inlined_call_operand.hbm [shape: bf16[16,32], index: 1, kind: input, shape index: {}]   ;;  %s493_s2 = inlined_call_operand.vmem [shape: f32[1,32], index: 2, kind: input, shape index: {}]   ;;  %s494_s3 = inlined_call_operand.hbm [shape: bf16[32,32], index: 3, kind: input, shape index: {}]   ;;  %s495_s4 = inlined_call_operand.vmem [shape: f32[1,32], index: 4, kind: input, shape index: {}]   ;;  %s496_s5 = inlined_call_operand.hbm [shape: bf16[32,128], index: 5, kind: input, shape index: {}]   ;;  %s497_s6 = inlined_call_operand.vmem [shape: f32[1,128], index: 6, kind: input, shape index: {}]   ;;  %s498_s7 = inlined_call_operand.vmem [shape: f32[1,128], index: 7, kind: input, shape index: {}]   ;;  %s499_s8 = inlined_call_operand.vmem [shape: f32[1,128], index: 8, kind: input, shape index: {}]   ;;  %s500_s9 = inlined_call_operand.hbm [shape: f32[8,128], index: 9, kind: output, shape index: {}]  }
   0x1   :  { %15 = vsyncpa [#allocation6], 0 }
   0x2   :  { %16 = vsyncpa [#allocation9], 0  ;;  %s33_s11 = sshll.u32 %s492_s1, 4  ;;  %s34_s11 = int_to_ptr.hbm [resolvable:$true] %s33_s11 }
   0x3   :  { %17 = vsyncpa [#allocation4], 0  ;;  %s404_s12 = smov [#allocation5]   ;;  %s23_s16 = sshll.u32 %s491_s0, 4  ;;  %s24_s16 = int_to_ptr.hbm [resolvable:$true] %s23_s16 }
   0x4   :  { %s35_s13 = sshll.u32 %s404_s12, 4  ;;  %s405_s17 = smov 64   ;;  %s36_s13 = int_to_ptr.vmem [resolvable:$true] %s35_s13 }
   0x5   :  { %s406_s18 = smov 4   ;;  %s407_s19 = smov [#allocation2]  }
   0x6   :  { %41 = dma.hbm_to_vmem [thread:$0]  %s34_s11, 128, %s36_s13, [#allocation6], %s405_s17, %s405_s17, %s406_s18  }
   0x7   :  { %s25_s20 = sshll.u32 %s407_s19, 4  ;;  %s48_s23 = sshll.u32 %s494_s3, 4  ;;  %s26_s20 = int_to_ptr.vmem [resolvable:$true] %s25_s20  ;;  %s49_s23 = int_to_ptr.hbm [resolvable:$true] %s48_s23 }
   0x8   :  { %28 = dma.hbm_to_vmem [thread:$0]  %s24_s16, 128, %s26_s20, [#allocation3]  }
   0x9   :  { %s63_s25 = sshll.u32 %s496_s5, 4  ;;  %s408_s26 = smov [#allocation7]   ;;  %s64_s25 = int_to_ptr.hbm [resolvable:$true] %s63_s25 }
   0xa   :  { %s50_s27 = sshll.u32 %s408_s26, 4  ;;  %s409_s0 = smov [#allocation8]   ;;  %s51_s27 = int_to_ptr.vmem [resolvable:$true] %s50_s27 }
   0xb   :  { %56 = dma.hbm_to_vmem [thread:$0]  %s49_s23, 256, %s51_s27, [#allocation6], %s405_s17, %s405_s17, %s406_s18  }
   0xc   :  { %s65_s28 = sshll.u32 %s409_s0, 4  ;;  %s66_s28 = int_to_ptr.vmem [resolvable:$true] %s65_s28 }
   0xd   :  { %71 = dma.hbm_to_vmem [thread:$0]  %s64_s25, 256, %s66_s28, [#allocation9], %s405_s17, %s405_s17, %s406_s18  }
   0xe   :  { %396 = dma.done.wait [#allocation3], 128  }
   0xf   :  { %397 = vsyncadd [#allocation3], 4294967168 }
  0x10   :  { %398 = dma.done.wait [#allocation6], 384  }
  0x11   :  { %399 = vsyncadd [#allocation6], 4294966912 }
  0x12   :  { %400 = dma.done.wait [#allocation9], 256  }
  0x13   :  { %401 = vsyncadd [#allocation9], 4294967040  ;;  %v257_v0 = vld [vmem:[#allocation5] sm:$0xff]  ;;  %v95_v1 = vld [vmem:[#allocation2] sm:$0xff]  ;;  %vm109_vm0 = vcmask 130048   ;;  %vm148_vm1 = vcmask 261120  }
  0x14   :  { %v96_v2 = vpack.c.bf16 %v95_v1, %v95_v1  ;;  %120 = vmatpush.bf16.msra.mxu0 %v257_v0  ;;  %v259_v3 = vld [vmem:[#allocation7 + $0x8] sm:$0xff]  ;;  %v258_v4 = vld [vmem:[#allocation7] sm:$0xff]  ;;  %v269_v5 = vld [vmem:[%s493_s2] ss:$0 sm:$0xff]  ;;  %s410_s14 = smov [#allocation10]   ;;  %s222_s18 = sshll.u32 %s500_s9, 4  ;;  %s223_s18 = int_to_ptr.hbm [resolvable:$true] %s222_s18 }
  0x15   :  { %158 = vmatpush.bf16.msra.mxu1 %v259_v3  ;;  %v261_v11 = vld [vmem:[#allocation8 + $0x8] sm:$0xff]  ;;  %v260_v12 = vld [vmem:[#allocation8] sm:$0xff]  ;;  %s220_s15 = sshll.u32 %s410_s14, 4  ;;  %s221_s15 = int_to_ptr.vmem [resolvable:$true] %s220_s15 }
  0x16   :  { %196 = vmatpush.bf16.msra.mxu2 %v261_v11  ;;  %v270_v13 = vld [vmem:[%s495_s4] ss:$0 sm:$0xff] }
  0x17   :  { %238 = vmatmul.msk.bf16.vlgmr.msra.gmra.mxu0 %vm109_vm0, %v96_v2  ;;  %v271_v19 = vld [vmem:[%s497_s6] ss:$0 sm:$0xff] }
  0x18   :  { %v272_v22 = vld [vmem:[%s498_s7] ss:$0 sm:$0xff] }
  0x19   :  { %159 = vmatpush.bf16.msra.mxu1 %v258_v4  ;;  %v273_v24 = vld [vmem:[%s499_s8] ss:$0 sm:$0xff] }
  0x1a   :  { %197 = vmatpush.bf16.msra.mxu2 %v260_v12 }
  0x94   :  { %v122_v6 = vpop.f32.mrf.mxu0 }
  0x95   :  { %v123_v7 = vadd.f32 %v269_v5, %v122_v6 }
  0x97   :  { %v126_v8 = vmax.f32 %v123_v7, 0.0 }
  0x99   :  { %v127_v9 = vpack.c.bf16 %v126_v8, %v126_v8 }
  0x9b   :  { %247 = vmatmul.msk.bf16.vlgmr.msra.gmra.mxu1 %vm148_vm1, %v127_v9 }
  0x9c   :  { %v124_v10 = vpop.f32.mrf.mxu0 }
 0x118   :  { %v161_v14 = vpop.f32.mrf.mxu1 }
 0x119   :  { %v162_v15 = vadd.f32 %v270_v13, %v161_v14 }
 0x11b   :  { %v165_v16 = vmax.f32 %v162_v15, 0.0 }
 0x11d   :  { %v166_v17 = vpack.c.bf16 %v165_v16, %v165_v16 }
 0x11f   :  { %256 = vmatmul.msk.bf16.vlgmr.msra.gmra.mxu2 %vm148_vm1, %v166_v17 }
 0x120   :  { %v163_v18 = vpop.f32.mrf.mxu1 }
 0x1a2   :  { %v199_v20 = vpop.f32.mrf.mxu2 }
 0x1a3   :  { %v200_v21 = vadd.f32 %v271_v19, %v199_v20 }
 0x1a5   :  { %274 = vtanh.f32 %v200_v21 }
 0x1aa   :  { %v201_v23 = vpop.f32.mrf.mxu2 }
 0x1ab   :  { %v275_v25 = vpop.eup %274 }
 0x1ac   :  { %v208_v26 = vmul.f32 %v275_v25, %v272_v22 }
 0x1ae   :  { %v213_v27 = vadd.f32 %v273_v24, %v208_v26 }
 0x1b0   :  { %214 = vst [vmem:[#allocation10] sm:$0xff] %v213_v27 }
 0x1b1   :  { %225 = dma.vmem_to_hbm [thread:$0]  %s221_s15, 128, %s223_s18, [#allocation4]  }
 0x1b2   :  { %402 = dma.done.wait [#allocation4], 128  }
 0x1b3   :  { %403 = vsyncadd [#allocation4], 4294967168 }
 0x1b4   :  { %230 = vsyncpa [#allocation3], 1 }
 0x1b5   :  { %231 = vsyncpa [#allocation6], 1 }
 0x1b6   :  { %232 = vsyncpa [#allocation9], 1 }
 0x1b7   :  { %233 = vsyncpa [#allocation4], 1 }

</bundles_post_ra>
